<compile_context>
chip_gen: v7x
topology: tpu7x:2x2x1
jax: 0.10.0
libtpu: 0.0.40
codegen_flags: <defaults>
</compile_context>

<pallas_src>
import jax
import jax.numpy as jnp
from jax.experimental import pallas as pl
from jax.experimental.pallas import tpu as pltpu


# ----------------------------------------------------------------------------
# Kernel: dtype-preserving roll along the lane (last) axis.
# ----------------------------------------------------------------------------
def _roll_kernel(shift_ref, x_ref, o_ref):
    # shift_ref: SMEM scalar-prefetch ref, shape (1,), int32, value in [0, W).
    # x_ref / o_ref: (tm, W) VMEM tiles, same dtype as the input.
    # pltpu.roll == jnp.roll semantics: out[:, j] = x[:, (j - shift) % W].
    o_ref[...] = pltpu.roll(x_ref[...], shift_ref[0], 1)


def _pick_row_tile(rows: int, w: int, itemsize: int) -> int:
    """Row tile: multiple of 8, <= ~2 MiB per tile (so 4x for double-buffered
    in+out stays far under scoped VMEM on v5e/v6e/v7x), and small enough to
    keep >= 2 grid steps when possible (v7x megacore)."""
    max_tile_bytes = 2 * 1024 * 1024
    cap = max(8, max_tile_bytes // max(1, w * itemsize))
    tm = min(rows, 512, cap)
    if rows >= 16:  # keep at least 2 parallel grid steps if we can
        tm = min(tm, max(8, (rows // 2) // 8 * 8))
    tm = max(8, (tm // 8) * 8)
    if rows < 8:    # a full-extent block is always legal
        tm = rows
    return tm


def horizontal_roll(img, steps):
    """Roll `img` by `steps` along its last axis (== torch.roll(img, steps, -1))."""
    n = img.shape[-1]

    # Lane-sparse widths would make every store a masked vst and waste >85% of
    # the vector unit; per the perf review those cases stay in plain XLA.
    if n % 128 != 0:
        return jnp.roll(img, steps, axis=-1)

    shift = jnp.mod(jnp.asarray(steps, jnp.int32), n).reshape((1,))

    orig_shape = img.shape
    rows = 1
    for d in orig_shape[:-1]:
        rows *= d
    x2d = img.reshape(rows, n)

    tm = _pick_row_tile(rows, n, x2d.dtype.itemsize)
    grid = (pl.cdiv(rows, tm),)

    out2d = pl.pallas_call(
        _roll_kernel,
        out_shape=jax.ShapeDtypeStruct((rows, n), img.dtype),
        grid_spec=pltpu.PrefetchScalarGridSpec(
            num_scalar_prefetch=1,
            grid=grid,
            in_specs=[pl.BlockSpec((tm, n), lambda i, shift_ref: (i, 0))],
            out_specs=pl.BlockSpec((tm, n), lambda i, shift_ref: (i, 0)),
        ),
        compiler_params=pltpu.CompilerParams(
            dimension_semantics=("parallel",),
            vmem_limit_bytes=32 * 1024 * 1024,
        ),
    )(shift, x2d)

    return out2d.reshape(orig_shape)


def random_horizontal_roll(img, key):
    """JAX/Pallas equivalent of RandomHorizentalRoll.forward.

    Draws steps ~ randint[-floor(W/2), floor(W/2)) from `key` (stands in for
    the host-side torch.randint) and rolls along the last axis.
    Returns (rolled_img, steps).
    """
    n = img.shape[-1]
    half = n // 2
    if half == 0:
        # W == 1: torch.randint(0, 0) would be invalid; the roll is a no-op.
        steps = jnp.zeros((), jnp.int32)
    else:
        steps = jax.random.randint(key, (), -half, half, dtype=jnp.int32)
    return horizontal_roll(img, steps), steps


if __name__ == "__main__":
    key = jax.random.PRNGKey(0)
    k_img, k_shift, k_img2, k_shift2 = jax.random.split(key, 4)

    # Lane-dense NCHW input -> Pallas kernel path (rows=128, tm=64, grid=(2,)).
    x = jax.random.normal(k_img, (2, 4, 16, 128), dtype=jnp.float32)
    out, steps = random_horizontal_roll(x, k_shift)
    out = jax.block_until_ready(out)
    ref = jnp.roll(x, steps, axis=-1)
    assert out.shape == x.shape and out.dtype == x.dtype
    assert bool(jnp.array_equal(out, ref)), "mismatch vs jnp.roll (pallas path)"

    # Narrow width (W=16, as in the original demo) dispatches to the XLA
    # fallback — no lane-sparse Pallas launch.
    y = jax.random.normal(k_img2, (2, 4, 16, 16), dtype=jnp.float32)
    out2, steps2 = random_horizontal_roll(y, k_shift2)
    out2 = jax.block_until_ready(out2)
    assert bool(jnp.array_equal(out2, jnp.roll(y, steps2, axis=-1))), "mismatch (fallback path)"

    print("KERNEL_OK")
</pallas_src>

<mosaic_0001>
module attributes {stable_mosaic.version = 11 : i64} {
  func.func @_roll_kernel(%arg0: i32, %arg1: memref<1xi32, #tpu.memory_space<smem>>, %arg2: memref<64x128xf32, #tpu.memory_space<vmem>>, %arg3: memref<64x128xf32, #tpu.memory_space<vmem>>) attributes {dimension_semantics = [#tpu.dimension_semantics<parallel>], iteration_bounds = array<i64: 2>, scalar_prefetch = 1 : i64, scratch_operands = 0 : i64, tpu.core_type = #tpu.core_type<tc>, window_params = [{transform_indices = @transform_0, window_bounds = array<i64: 64, 128>}, {transform_indices = @transform_1, window_bounds = array<i64: 64, 128>}]} {
    %c0 = arith.constant 0 : index
    %c0_0 = arith.constant 0 : index
    %0 = vector.load %arg2[%c0, %c0_0] : memref<64x128xf32, #tpu.memory_space<vmem>>, vector<64x128xf32>
    %c0_1 = arith.constant 0 : index
    %1 = memref.load %arg1[%c0_1] : memref<1xi32, #tpu.memory_space<smem>>
    %2 = tpu.dynamic_rotate %0 by %1 dim 1 : vector<64x128xf32>, i32 -> vector<64x128xf32>
    %c0_2 = arith.constant 0 : index
    %c0_3 = arith.constant 0 : index
    %3 = vector.load %arg3[%c0_2, %c0_3] : memref<64x128xf32, #tpu.memory_space<vmem>>, vector<64x128xf32>
    tpu.vector_store %arg3[%c0_2, %c0_3], %2 {strides = array<i32>} : memref<64x128xf32, #tpu.memory_space<vmem>>, vector<64x128xf32>,
    return
  }
  func.func @transform_0(%arg0: i32, %arg1: memref<1xi32, #tpu.memory_space<smem>>) -> (i32, i32) {
    %c0_i32 = arith.constant 0 : i32
    %c0_i32_0 = arith.constant 0 : i32
    return %arg0, %c0_i32 : i32, i32
  }
  func.func @transform_1(%arg0: i32, %arg1: memref<1xi32, #tpu.memory_space<smem>>) -> (i32, i32) {
    %c0_i32 = arith.constant 0 : i32
    %c0_i32_0 = arith.constant 0 : i32
    return %arg0, %c0_i32 : i32, i32
  }
}

</mosaic_0001>

<bundles_post_ra>
// kernel: tpu_custom_call.1
= control target key start
LH: loop header
LB: loop body
LE: loop exit
PB: predicated region body
PF: predicated region fallthrough
CT: control target
= control target key end

     0   :  { %s611_s0 = inlined_call_operand.<no memory space> [shape: s32[1], index: 0, kind: input, shape index: {}]   ;;  %s612_s1 = inlined_call_operand.hbm [shape: f32[128,128], index: 1, kind: input, shape index: {}]   ;;  %s613_s2 = inlined_call_operand.hbm [shape: f32[128,128], index: 2, kind: output, shape index: {}]  }
   0x1   :  { %7 = sst [smem:[#allocation3]] %s611_s0 }
   0x2   :  { %8 = vsyncpa [#allocation5], 0 }
   0x3   :  { %10 = vsyncpa [#allocation5 + $0x1], 0 }
   0x4   :  { %11 = vsyncpa [#allocation6], 0 }
   0x5   :  { %13 = vsyncpa [#allocation6 + $0x1], 0  ;;  %s449_s11 = smov 0   ;;  %s451_s12 = smov 0  }
   0x6   :  { %s453_s13 = smov 0   ;;  %s455_s14 = smov 0  }
   0x7 LB: > { %s470_s0 = sadd.s32 4294967295, %s423_s14   ;;  %s261_s15 = sadd.s32 4294967294, %s423_s14   ;;  %s423_s14 = sphi %s455_s14, %s626_s14   ;;  %s419_s13 = sphi %s453_s13, %s625_s13   ;;  %s415_s12 = sphi %s451_s12, %s624_s12   ;;  %s411_s11 = sphi %s449_s11, %s623_s11  }
   0x8   : > { %s474_s16 = sadd.s32 1, %s423_s14   ;;  %s26_s17 = sadd.s32 1, %s419_s13 }
   0x9   : > { %s23_s18 = ssub.s32 %s423_s14, %s474_s16  ;;  %p33_p0 = scmp.ne.s32.totalorder %s419_s13, %s415_s12 }
   0xa   : > { %p24_p1 = scmp.eq.s32.totalorder %s23_s18, 0  ;;  %p34_p2 = scmp.eq.s32.totalorder %s423_s14, 0 }
   0xb   : > { %p39_p3 = scmp.ne.s32.totalorder %s415_s12, %s411_s11  ;;  %p40_p4 = scmp.eq.s32.totalorder %s470_s0, 0 }
   0xc   : > { %s486_s19 = scalar_select %p24_p1, %s419_s13, %s26_s17  }
   0xd   : > { %p488_p5 = por %p34_p2, %p33_p0  ;;  %p492_p6 = por %p40_p4, %p39_p3 }
   0xe   : > { %p63_p7 = scmp.eq.s32.totalorder %s470_s0, 1  ;;  %p69_p8 = scmp.eq.s32.totalorder %s261_s15, 1 }
   0xf   : > { %p289_p10 = scmp.lt.s32.totalorder %s423_s14, 2  ;;  %s89_s24 = sand.u32 1, %s419_s13  }
  0x10   : > { %p499_p11 = por %p63_p7, %p33_p0  ;;  %p503_p12 = por %p69_p8, %p39_p3 }
  0x11   : > { %s275_s25 = sshll.u32 %s423_s14, 10  ;;  %s264_s26 = sshll.u32 %s89_s24, 6 }
  0x12   : > { %s617_s22 = scalar_select %p499_p11, 1, 0 }
  0x13   : > { %s618_s23 = scalar_select %p503_p12, 1, 0 }
  0x14   : > { %s512_s29 = scalar_lea.hbm %s612_s1, %s275_s25  ;;  %s93_s30 = scalar_lea.vmem [#allocation4], %s264_s26 }
  0x15   : > { %s100_s3 = sshll.u32 %s93_s30, 4  ;;  %p516_p13 = pnand %p289_p10, %p488_p5  ;;  %s520_s3 = int_to_ptr.vmem [resolvable:$true] %s100_s3 }
  0x16   : > { %s522_s5 = scalar_lea.sflag [#allocation5], %s89_s24  ;;  %s327_s6 = scalar_lea.hbm %s512_s29, 1024 }
  0x17   : > { %p328_p0 = scmp.ne.s32.totalorder %s512_s29, %s327_s6  ;;  %p329_p1 = pneg %p516_p13 }
  0x18   : > { %s332_s9 = scalar_lea.hbm %s612_s1, 2048  ;;  %p333_p4 = scmp.lt.u32.totalorder %s512_s29, %s612_s1 }
  0x19   : > { %p330_p2 = pnand %p329_p1, %p328_p0  ;;  %p334_p5 = scmp.lt.u32.totalorder %s332_s9, %s327_s6 }
  0x1a   : > { %p336_p8 = scmp.lt.u32.totalorder %s327_s6, %s512_s29 }
  0x1b   : > { %p331_p3 = pneg %p330_p2  ;;  %p335_p7 = por %p334_p5, %p333_p4 }
  0x1d   : > { %p337_p10 = por %p336_p8, %p335_p7 }
  0x1f   : > { %p338_p9 = pnand %p337_p10, %p331_p3 }
  0x21   : > { %341 = shalt.err (!%p338_p9)
}
  0x22   : > { %s342_s17 = scalar_lea.vmem %s520_s3, 1024  ;;  %s425_s18 = smov [#allocation4]  }
  0x23   : > { %p343_p0 = scmp.ne.s32.totalorder %s520_s3, %s342_s17  ;;  %s347_s20 = sshll.u32 %s425_s18, 4  ;;  %s348_s20 = int_to_ptr.vmem [resolvable:$false] %s347_s20 }
  0x24   : > { %s349_s24 = scalar_lea.vmem %s348_s20, 2048  ;;  %p350_p11 = scmp.lt.s32.totalorder %s520_s3, %s348_s20 }
  0x25   : > { %p345_p2 = pnand %p343_p0, %p329_p1  ;;  %p351_p4 = scmp.lt.s32.totalorder %s349_s24, %s342_s17 }
  0x27   : > { %p346_p12 = pneg %p345_p2  ;;  %p352_p5 = por %p351_p4, %p350_p11 }
  0x29   : > { %p353_p7 = pnand %p352_p5, %p346_p12 }
  0x2b   : > { %356 = shalt.err (!%p353_p7)
}
  0x2c   : > { %s426_s25 = smov 128   ;;  %s427_s26 = smov 8  }
  0x2d   : > { %284 = dma.hbm_to_vmem [thread:$0]  (!%p516_p13), %s512_s29, 1024, %s520_s3, %s522_s5, %s426_s25, %s426_s25, %s427_s26  }
  0x2e   : > { %p267_p9 = scmp.ge.s32.totalorder %s423_s14, 1  ;;  %p108_p1 = scmp.lt.s32.totalorder %s423_s14, 3 }
  0x30   : > { %p109_p3 = pnand %p267_p9, %p108_p1 }
  0x31   : > { %s553_s27 = sand.u32 (!%p109_p3), 1, %s415_s12  }
  0x32   : > { %112 = sbr.rel (%p109_p3) target bundleno = 207 (0xcf), region = 24  ;;  %s268_s28 = sshll.u32 (!%p109_p3), %s553_s27, 6 }
  0x33   : > { %s115_s30 = scalar_lea.sflag (!%p109_p3), [#allocation5], %s553_s27  ;;  %s118_s6 = scalar_lea.vmem (!%p109_p3), [#allocation4], %s268_s28 }
  0x39   : > { %402 = dma.done.wait (%p492_p6), %s115_s30, 1024  }
  0x3a   : > { %404 = vsyncadd (%p492_p6), %s115_s30, 4294966272  ;;  %s147_s4 = sld [smem:[#allocation3]]  ;;  %v141_v0 = vld [vmem:[%s118_s6 + $0x10] sm:$0xff]  ;;  %v139_v1 = vld [vmem:[%s118_s6] sm:$0xff]  ;;  %s136_s21 = scalar_lea.vmem [#allocation7], %s268_s28 }
  0x3b   : > { %v142_v2 = vld [vmem:[%s118_s6 + $0x18] sm:$0xff]  ;;  %v140_v3 = vld [vmem:[%s118_s6 + $0x8] sm:$0xff]  ;;  %v143_v5 = vld [vmem:[%s118_s6 + $0x20] sm:$0xff]  ;;  %s188_s3 = sshll.u32 %s136_s21, 4  ;;  %s276_s5 = sshll.u32 %s470_s0, 10  ;;  %s562_s3 = int_to_ptr.vmem [resolvable:$true] %s188_s3 }
  0x3c   : > { %v144_v4 = vld [vmem:[%s118_s6 + $0x28] sm:$0xff]  ;;  %v146_v6 = vld [vmem:[%s118_s6 + $0x38] sm:$0xff]  ;;  %v145_v7 = vld [vmem:[%s118_s6 + $0x30] sm:$0xff]  ;;  %s567_s9 = scalar_lea.hbm %s613_s2, %s276_s5  ;;  %s175_s10 = scalar_lea.sflag [#allocation6], %s553_s27 }
  0x3d   : > { %s357_s0 = scalar_lea.vmem %s562_s3, 1024  ;;  %p620_p11 = scmp.ne.s32.totalorder %s617_s22, 0 }
  0x3e   : > { %p358_p6 = scmp.ne.s32.totalorder %s562_s3, %s357_s0  ;;  %s428_s15 = smov [#allocation7]  }
  0x3f   : > { %s361_s17 = sshll.u32 %s428_s15, 4  ;;  %s362_s17 = int_to_ptr.vmem [resolvable:$false] %s361_s17 }
  0x40   : > { %s148_s29 = sand.u32 127, %s147_s4   ;;  %p359_p12 = pnand %p358_p6, %p620_p11 }
  0x41   : > { %154 = vrot.lane.b32.xlu1 %v141_v0, %s148_s29  ;;  %150 = vrot.lane.b32.xlu0 %v139_v1, %s148_s29  ;;  %s363_s18 = scalar_lea.vmem %s362_s17, 2048  ;;  %p364_p8 = scmp.lt.s32.totalorder %s562_s3, %s362_s17 }
  0x42   : > { %p360_p13 = pneg %p359_p12  ;;  %p365_p10 = scmp.lt.s32.totalorder %s363_s18, %s357_s0 }
  0x44   : > { %p366_p0 = por %p365_p10, %p364_p8 }
  0x45   : > { %156 = vrot.lane.b32.xlu1 %v142_v2, %s148_s29  ;;  %152 = vrot.lane.b32.xlu0 %v140_v3, %s148_s29 }
  0x46   : > { %p367_p2 = pnand %p366_p0, %p360_p13 }
  0x49   : > { %160 = vrot.lane.b32.xlu1 %v144_v4, %s148_s29  ;;  %158 = vrot.lane.b32.xlu0 %v143_v5, %s148_s29 }
  0x4d   : > { %164 = vrot.lane.b32.xlu1 %v146_v6, %s148_s29  ;;  %162 = vrot.lane.b32.xlu0 %v145_v7, %s148_s29 }
  0xb3   : > { %v155_v8 = vpop.permute.xlu1 %154  ;;  %v151_v9 = vpop.permute.xlu0 %150 }
  0xb4   : > { %168 = vst [vmem:[%s136_s21 + $0x10] sm:$0xff] %v155_v8  ;;  %166 = vst [vmem:[%s136_s21] sm:$0xff] %v151_v9 }
  0xb7   : > { %v157_v10 = vpop.permute.xlu1 %156  ;;  %v153_v11 = vpop.permute.xlu0 %152 }
  0xb8   : > { %169 = vst [vmem:[%s136_s21 + $0x18] sm:$0xff] %v157_v10  ;;  %167 = vst [vmem:[%s136_s21 + $0x8] sm:$0xff] %v153_v11 }
  0xbb   : > { %v161_v12 = vpop.permute.xlu1 %160  ;;  %v159_v13 = vpop.permute.xlu0 %158 }
  0xbc   : > { %171 = vst [vmem:[%s136_s21 + $0x28] sm:$0xff] %v161_v12  ;;  %170 = vst [vmem:[%s136_s21 + $0x20] sm:$0xff] %v159_v13 }
  0xbf   : > { %v165_v14 = vpop.permute.xlu1 %164  ;;  %v163_v15 = vpop.permute.xlu0 %162 }
  0xc0   : > { %173 = vst [vmem:[%s136_s21 + $0x38] sm:$0xff] %v165_v14  ;;  %172 = vst [vmem:[%s136_s21 + $0x30] sm:$0xff] %v163_v15 }
  0xc1   : > { %370 = shalt.err (!%p367_p2)
}
  0xc2   : > { %s371_s20 = scalar_lea.hbm %s567_s9, 1024  ;;  %s375_s26 = scalar_lea.hbm %s613_s2, 2048 }
  0xc3   : > { %p372_p4 = scmp.ne.s32.totalorder %s567_s9, %s371_s20  ;;  %p376_p9 = scmp.lt.u32.totalorder %s567_s9, %s613_s2 }
  0xc4   : > { %p377_p1 = scmp.lt.u32.totalorder %s375_s26, %s371_s20  ;;  %p379_p6 = scmp.lt.u32.totalorder %s371_s20, %s567_s9 }
  0xc5   : > { %p373_p5 = pnand %p372_p4, %p620_p11 }
  0xc6   : > { %p378_p3 = por %p377_p1, %p376_p9 }
  0xc7   : > { %p374_p7 = pneg %p373_p5 }
  0xc8   : > { %p380_p12 = por %p379_p6, %p378_p3 }
  0xca   : > { %p381_p13 = pnand %p380_p12, %p374_p7 }
  0xcc   : > { %384 = shalt.err (!%p381_p13)
}
  0xcd   : > { %s429_s6 = smov 128   ;;  %s430_s4 = smov 8  }
  0xce   : > { %279 = dma.vmem_to_hbm [thread:$0]  (%p620_p11), %s562_s3, 1024, %s567_s9, %s175_s10, %s429_s6, %s429_s6, %s430_s4  }
  0xcf PF: > { %s203_s29 = sand.u32 1, %s411_s11   ;;  %p621_p8 = scmp.ne.s32.totalorder %s618_s23, 0 }
  0xd0   : > { %p622_p10 = scmp.ge.s32.totalorder %s423_s14, 2  ;;  %s204_s21 = scalar_lea.sflag [#allocation6], %s203_s29 }
  0xd2   : > { %p286_p0 = pnand %p622_p10, %p621_p8 }
  0xd4   : > { %406 = dma.done.wait (!%p286_p0), %s204_s21, 1024  }
  0xd5   : > { %408 = vsyncadd (!%p286_p0), %s204_s21, 4294966272  ;;  %p16_p2 = scmp.ge.s32.totalorder %s474_s16, 4   ;;  %s623_s11 = smov %s415_s12 }
  0xd6   : > { %s624_s12 = smov %s419_s13  ;;  %s625_s13 = smov %s486_s19 }
  0xd7   : > { %s626_s14 = smov %s474_s16  ;;  %18 = sbr.rel (!%p16_p2) target bundleno = 7 (0x7), region = 69 }
  0xde   :  { %209 = vsyncpa [#allocation5], 1 }
  0xdf   :  { %211 = vsyncpa [#allocation5 + $0x1], 1 }
  0xe0   :  { %212 = vsyncpa [#allocation6], 1 }
  0xe1   :  { %214 = vsyncpa [#allocation6 + $0x1], 1 }

</bundles_post_ra>
